<compile_context>
chip_gen: v6e
topology: v6e:2x2x1
jax: 0.10.0
libtpu: 0.0.40
codegen_flags: <defaults>
</compile_context>

<pallas_src>
import jax
import jax.numpy as jnp
from jax.experimental import pallas as pl
from jax.experimental.pallas import tpu as pltpu


_MIN_TILES = 4  # >= 2 tiles per TensorCore on v7x (2 TCs); harmless elsewhere


def _disc_matvec_kernel(h_pl_ref, h_mi_ref, v_ref, b_ref, out_ref):
    """DGI fast path: sc[n] = <h[n,:], v> + b with v = W @ c resident (VPU+XLU)."""
    v = v_ref[...]                                    # (1, H) f32, resident block
    b = b_ref[0, 0]                                   # scalar bias from SMEM
    h1 = h_pl_ref[...].astype(jnp.float32)
    h2 = h_mi_ref[...].astype(jnp.float32)
    out_ref[0, :, :] = jnp.sum(h1 * v, axis=-1, keepdims=True) + b
    out_ref[1, :, :] = jnp.sum(h2 * v, axis=-1, keepdims=True) + b


def _disc_rowwise_kernel(h_pl_ref, h_mi_ref, c_ref, wt_ref, b_ref, out_ref):
    """General path (per-row summary): t = c @ W.T fused in-kernel, W.T resident."""
    b = b_ref[0, 0]
    t = jnp.dot(c_ref[...], wt_ref[...], preferred_element_type=jnp.float32)  # (tn, H)
    h1 = h_pl_ref[...].astype(jnp.float32)
    h2 = h_mi_ref[...].astype(jnp.float32)
    out_ref[0, :, :] = jnp.sum(h1 * t, axis=-1, keepdims=True) + b
    out_ref[1, :, :] = jnp.sum(h2 * t, axis=-1, keepdims=True) + b


def _vmem_budgets():
    """Return (stream_budget_bytes, vmem_limit_bytes) for this chip generation."""
    cap = None
    try:
        info = pltpu.get_tpu_info()
        cap = getattr(info, "vmem_capacity_bytes", None)
    except Exception:
        cap = None
    if cap is None:
        cap = 64 * 1024 * 1024                    # conservative: v7x per-TC VMEM
    if cap >= 100 * 1024 * 1024:                  # v5e / v6e: 128 MiB physical
        return 64 * 1024 * 1024, 96 * 1024 * 1024
    return 24 * 1024 * 1024, 32 * 1024 * 1024    # v7x: 64 MiB physical per TC


def _plain_scores(c, h_pl, h_mi, w, b0):
    """Tiny-problem / giant-H bypass: plain XLA in f32."""
    t = jnp.broadcast_to(c.astype(jnp.float32), h_pl.shape) @ w.astype(jnp.float32).T
    s1 = jnp.sum(h_pl.astype(jnp.float32) * t, axis=-1) + b0
    s2 = jnp.sum(h_mi.astype(jnp.float32) * t, axis=-1) + b0
    return s1, s2


def discriminator_forward(c, h_pl, h_mi, weight, bias,
                          s_bias1=None, s_bias2=None, *,
                          max_tile_n=8192, stream_dtype=None,
                          min_kernel_bytes=256 * 1024):
    """Forward pass of the DGI Discriminator.

    c:      (1, H), (H,) or (N, H)   summary vector(s) (torch expand_as semantics)
    h_pl:   (N, H)   positive node embeddings
    h_mi:   (N, H)   negative (corrupted) node embeddings
    weight: (1, H, H) or (H, H)      nn.Bilinear(n_h, n_h, 1).weight
    bias:   (1,) or ()               nn.Bilinear(n_h, n_h, 1).bias
    stream_dtype: optionally stream the large inputs in a narrower dtype
                  (e.g. jnp.bfloat16); accumulation stays f32.
    returns logits: (2N,) f32  == cat([sc_1, sc_2], dim=0)
    """
    h_pl = jnp.asarray(h_pl)
    h_mi = jnp.asarray(h_mi)
    N, H = h_pl.shape

    c = jnp.asarray(c)
    if c.ndim == 1:
        c = c[None, :]
    w = jnp.asarray(weight)
    if w.ndim == 3:
        w = w[0]                                             # (H, H)
    b0 = jnp.asarray(bias, jnp.float32).reshape(-1)[0]       # scalar bias

    per_row = (c.shape[0] == N) and (N > 1)                  # expand_as is identity
    stream_dt = jnp.dtype(stream_dtype) if stream_dtype is not None else jnp.dtype(h_pl.dtype)
    item = stream_dt.itemsize
    n_streams = 3 if per_row else 2
    resident = (2 * H * H * item) if per_row else (2 * H * 4)

    stream_budget, vmem_limit = _vmem_budgets()

    use_kernel = (n_streams * N * H * item >= min_kernel_bytes
                  and resident <= stream_budget // 2)

    sc1 = sc2 = None
    if not use_kernel:
        # Kernel launch + pipeline overhead dominates tiny inputs; also taken if
        # W.T would not fit resident in VMEM for the per-row fallback (huge H).
        sc1, sc2 = _plain_scores(c, h_pl, h_mi, w, b0)
    else:
        # ---- tile selection ------------------------------------------------
        row_align = max(8, 32 // item)            # f32: 8, bf16: 16, int8: 32
        cap = (stream_budget - resident) // (n_streams * 2 * H * item)
        cap = max(row_align, (cap // row_align) * row_align)
        cap = min(cap, max(row_align, (max_tile_n // row_align) * row_align))
        # Never collapse to grid=(1,): split into >= _MIN_TILES tiles so both
        # v7x TensorCores get work and input-DMA/compute/writeback overlap.
        split = max(row_align, pl.cdiv(N, _MIN_TILES * row_align) * row_align)
        tile_n = max(row_align, min(cap, split))
        grid = (pl.cdiv(N, tile_n),)

        h_pl_s = h_pl.astype(stream_dt)
        h_mi_s = h_mi.astype(stream_dt)
        b2d = b0.reshape(1, 1)

        h_spec = pl.BlockSpec((tile_n, H), lambda i: (i, 0))
        smem_spec = pl.BlockSpec(memory_space=pltpu.MemorySpace.SMEM)
        out_spec = pl.BlockSpec((2, tile_n, 1), lambda i: (0, i, 0))

        if per_row:
            kernel = _disc_rowwise_kernel
            c_s = c.astype(stream_dt)
            wt_s = w.T.astype(stream_dt)              # (H, H) so t = c @ W.T in-kernel
            operands = (h_pl_s, h_mi_s, c_s, wt_s, b2d)
            in_specs = [h_spec, h_spec, h_spec,
                        pl.BlockSpec((H, H), lambda i: (0, 0)), smem_spec]
            flops = 2 * N * H * H + 4 * N * H
            bytes_acc = 3 * N * H * item + H * H * item + 2 * N * 4
        else:
            kernel = _disc_matvec_kernel
            # v = W @ c: tiny mat-vec done once, kept in f32 (lane-major, resident)
            # so the precompute never loses precision vs torch's f32 bilinear.
            v = (w.astype(jnp.float32) @ c.astype(jnp.float32)[0]).reshape(1, H)
            operands = (h_pl_s, h_mi_s, v, b2d)
            in_specs = [h_spec, h_spec,
                        pl.BlockSpec((1, H), lambda i: (0, 0)), smem_spec]
            flops = 4 * N * H
            bytes_acc = 2 * N * H * item + H * 4 + 2 * N * 4

        out = pl.pallas_call(
            kernel,
            out_shape=jax.ShapeDtypeStruct((2, N, 1), jnp.float32),
            grid=grid,
            in_specs=in_specs,
            out_specs=out_spec,
            compiler_params=pltpu.CompilerParams(
                dimension_semantics=("parallel",),
                vmem_limit_bytes=int(vmem_limit)),
            cost_estimate=pl.CostEstimate(
                flops=int(flops), transcendentals=0,
                bytes_accessed=int(bytes_acc)),
        )(*operands)

        if s_bias1 is None and s_bias2 is None:
            return out[:, :, 0].reshape(2 * N)        # torch.cat is a free reshape
        sc1 = out[0, :, 0]
        sc2 = out[1, :, 0]

    if s_bias1 is not None:
        sc1 = sc1 + s_bias1
    if s_bias2 is not None:
        sc2 = sc2 + s_bias2
    return jnp.concatenate([sc1, sc2], axis=0)


if __name__ == "__main__":
    key = jax.random.PRNGKey(0)
    n_h, N = 32, 20
    k1, k2, k3, k4, k5 = jax.random.split(key, 5)

    # Inputs (float32, PyTorch defaults).
    c = jax.random.normal(k1, (1, n_h), jnp.float32)       # summary vector
    h_pl = jax.random.normal(k2, (N, n_h), jnp.float32)    # positive samples
    h_mi = jax.random.normal(k3, (N, n_h), jnp.float32)    # negative samples

    # Deterministic params mirroring __init__: xavier_uniform_ on the Bilinear
    # weight (1, n_h, n_h); bias filled with 0.
    fan_in, fan_out = n_h * n_h, 1 * n_h
    bound = (6.0 / (fan_in + fan_out)) ** 0.5
    weight = jax.random.uniform(k4, (1, n_h, n_h), jnp.float32, -bound, bound)
    bias = jnp.zeros((1,), jnp.float32)

    def ref_forward(c_, h_pl_, h_mi_):
        t = jnp.broadcast_to(c_, h_pl_.shape) @ weight[0].T
        s1 = jnp.sum(h_pl_ * t, axis=-1) + bias[0]
        s2 = jnp.sum(h_mi_ * t, axis=-1) + bias[0]
        return jnp.concatenate([s1, s2], axis=0)

    # 1) DGI fast path through the Pallas kernel; bypass disabled and tile
    #    forced small so the grid has several steps incl. a clipped remainder.
    out1 = jax.block_until_ready(discriminator_forward(
        c, h_pl, h_mi, weight, bias, max_tile_n=8, min_kernel_bytes=0))
    assert out1.shape == (2 * N,), out1.shape
    assert jnp.allclose(out1, ref_forward(c, h_pl, h_mi), atol=1e-4, rtol=1e-4), \
        "fast-path mismatch vs reference"

    # 2) Per-row fallback (distinct summary per row), fused t = c @ W.T in-kernel.
    c_rows = jax.random.normal(k5, (N, n_h), jnp.float32)
    out2 = jax.block_until_ready(discriminator_forward(
        c_rows, h_pl, h_mi, weight, bias, max_tile_n=8, min_kernel_bytes=0))
    assert jnp.allclose(out2, ref_forward(c_rows, h_pl, h_mi),
                        atol=1e-4, rtol=1e-4), "rowwise-path mismatch vs reference"

    # 3) Optional bf16 streaming (kernel path, f32 accumulation) — loose tolerance.
    out3 = jax.block_until_ready(discriminator_forward(
        c, h_pl, h_mi, weight, bias, min_kernel_bytes=0,
        stream_dtype=jnp.bfloat16))
    assert out3.shape == (2 * N,), out3.shape
    assert jnp.allclose(out3, ref_forward(c, h_pl, h_mi), atol=1e-1, rtol=1e-1), \
        "bf16-stream mismatch vs reference"

    # 4) Small-problem bypass (default threshold) + s_bias handling.
    sb1 = jax.random.normal(k1, (N,), jnp.float32)
    sb2 = jax.random.normal(k2, (N,), jnp.float32)
    out4 = jax.block_until_ready(discriminator_forward(
        c, h_pl, h_mi, weight, bias, s_bias1=sb1, s_bias2=sb2))
    ref4 = ref_forward(c, h_pl, h_mi) + jnp.concatenate([sb1, sb2], axis=0)
    assert jnp.allclose(out4, ref4, atol=1e-4, rtol=1e-4), "bypass mismatch vs reference"

    print("KERNEL_OK")
</pallas_src>

<mosaic_0001>
module attributes {stable_mosaic.version = 11 : i64} {
  func.func @_disc_matvec_kernel(%arg0: i32, %arg1: memref<8x32xf32, #tpu.memory_space<vmem>>, %arg2: memref<8x32xf32, #tpu.memory_space<vmem>>, %arg3: memref<1x32xf32, #tpu.memory_space<vmem>>, %arg4: memref<1x1xf32, #tpu.memory_space<smem>>, %arg5: memref<2x8x1xf32, #tpu.memory_space<vmem>>) attributes {dimension_semantics = [#tpu.dimension_semantics<parallel>], iteration_bounds = array<i64: 3>, scalar_prefetch = 0 : i64, scratch_operands = 0 : i64, tpu.core_type = #tpu.core_type<tc>, window_params = [{transform_indices = @transform_0, window_bounds = array<i64: 8, 32>}, {transform_indices = @transform_1, window_bounds = array<i64: 8, 32>}, {pipeline_mode = #tpu.pipeline_mode<synchronous>, transform_indices = @transform_2, window_bounds = array<i64: 1, 32>}, {transform_indices = @transform_3, window_bounds = array<i64: 1, 1>}, {transform_indices = @transform_4, window_bounds = array<i64: 2, 8, 1>}]} {
    %c0 = arith.constant 0 : index
    %c0_0 = arith.constant 0 : index
    %0 = vector.load %arg3[%c0, %c0_0] : memref<1x32xf32, #tpu.memory_space<vmem>>, vector<1x32xf32>
    %c0_1 = arith.constant 0 : index
    %c0_2 = arith.constant 0 : index
    %1 = memref.load %arg4[%c0_1, %c0_2] : memref<1x1xf32, #tpu.memory_space<smem>>
    %c0_3 = arith.constant 0 : index
    %c0_4 = arith.constant 0 : index
    %2 = vector.load %arg1[%c0_3, %c0_4] : memref<8x32xf32, #tpu.memory_space<vmem>>, vector<8x32xf32>
    %c0_5 = arith.constant 0 : index
    %c0_6 = arith.constant 0 : index
    %3 = vector.load %arg2[%c0_5, %c0_6] : memref<8x32xf32, #tpu.memory_space<vmem>>, vector<8x32xf32>
    %4 = vector.broadcast %0 : vector<1x32xf32> to vector<8x32xf32>
    %5 = arith.mulf %2, %4 : vector<8x32xf32>
    %cst = arith.constant dense<0.000000e+00> : vector<8xf32>
    %6 = vector.multi_reduction <add>, %5, %cst [1] : vector<8x32xf32> to vector<8xf32>
    %7 = vector.shape_cast %6 : vector<8xf32> to vector<8x1xf32>
    %8 = vector.broadcast %1 : f32 to vector<8x1xf32>
    %9 = arith.addf %7, %8 : vector<8x1xf32>
    %c0_7 = arith.constant 0 : index
    %c0_8 = arith.constant 0 : index
    %c0_9 = arith.constant 0 : index
    %10 = vector.load %arg5[%c0_7, %c0_8, %c0_9] : memref<2x8x1xf32, #tpu.memory_space<vmem>>, vector<1x8x1xf32>
    %11 = vector.shape_cast %10 : vector<1x8x1xf32> to vector<8x1xf32>
    %12 = vector.shape_cast %9 : vector<8x1xf32> to vector<1x8x1xf32>
    tpu.vector_store %arg5[%c0_7, %c0_8, %c0_9], %12 {strides = array<i32>} : memref<2x8x1xf32, #tpu.memory_space<vmem>>, vector<1x8x1xf32>,
    %13 = vector.broadcast %0 : vector<1x32xf32> to vector<8x32xf32>
    %14 = arith.mulf %3, %13 : vector<8x32xf32>
    %cst_10 = arith.constant dense<0.000000e+00> : vector<8xf32>
    %15 = vector.multi_reduction <add>, %14, %cst_10 [1] : vector<8x32xf32> to vector<8xf32>
    %16 = vector.shape_cast %15 : vector<8xf32> to vector<8x1xf32>
    %17 = vector.broadcast %1 : f32 to vector<8x1xf32>
    %18 = arith.addf %16, %17 : vector<8x1xf32>
    %c1 = arith.constant 1 : index
    %c0_11 = arith.constant 0 : index
    %c0_12 = arith.constant 0 : index
    %19 = vector.load %arg5[%c1, %c0_11, %c0_12] : memref<2x8x1xf32, #tpu.memory_space<vmem>>, vector<1x8x1xf32>
    %20 = vector.shape_cast %19 : vector<1x8x1xf32> to vector<8x1xf32>
    %21 = vector.shape_cast %18 : vector<8x1xf32> to vector<1x8x1xf32>
    tpu.vector_store %arg5[%c1, %c0_11, %c0_12], %21 {strides = array<i32>} : memref<2x8x1xf32, #tpu.memory_space<vmem>>, vector<1x8x1xf32>,
    return
  }
  func.func @transform_0(%arg0: i32) -> (i32, i32) {
    %c0_i32 = arith.constant 0 : i32
    %c0_i32_0 = arith.constant 0 : i32
    return %arg0, %c0_i32 : i32, i32
  }
  func.func @transform_1(%arg0: i32) -> (i32, i32) {
    %c0_i32 = arith.constant 0 : i32
    %c0_i32_0 = arith.constant 0 : i32
    return %arg0, %c0_i32 : i32, i32
  }
  func.func @transform_2(%arg0: i32) -> (i32, i32) {
    %c0_i32 = arith.constant 0 : i32
    %c0_i32_0 = arith.constant 0 : i32
    %c0_i32_1 = arith.constant 0 : i32
    return %c0_i32, %c0_i32_0 : i32, i32
  }
  func.func @transform_3(%arg0: i32) -> (i32, i32) {
    %c0_i32 = arith.constant 0 : i32
    %c0_i32_0 = arith.constant 0 : i32
    %c0_i32_1 = arith.constant 0 : i32
    return %c0_i32, %c0_i32_0 : i32, i32
  }
  func.func @transform_4(%arg0: i32) -> (i32, i32, i32) {
    %c0_i32 = arith.constant 0 : i32
    %c0_i32_0 = arith.constant 0 : i32
    %c0_i32_1 = arith.constant 0 : i32
    return %c0_i32, %arg0, %c0_i32_0 : i32, i32, i32
  }
}

</mosaic_0001>

<bundles_post_ra>
// kernel: tpu_custom_call.1
= control target key start
LH: loop header
LB: loop body
LE: loop exit
PB: predicated region body
PF: predicated region fallthrough
CT: control target
= control target key end

     0   :  { %s758_s0 = inlined_call_operand.hbm [shape: f32[20,32], index: 0, kind: input, shape index: {}]   ;;  %s759_s1 = inlined_call_operand.hbm [shape: f32[20,32], index: 1, kind: input, shape index: {}]   ;;  %s760_s2 = inlined_call_operand.vmem [shape: f32[1,32], index: 2, kind: input, shape index: {}]   ;;  %s761_s3 = inlined_call_operand.<no memory space> [shape: f32[1,1], index: 3, kind: input, shape index: {}]   ;;  %s762_s4 = inlined_call_operand.vmem [shape: f32[2,20,1], index: 4, kind: output, shape index: {}]  }
   0x1   :  { %9 = sst [smem:[#allocation2]] %s761_s3 }
   0x2   :  { %10 = vsyncpa [#allocation4], 0 }
   0x3   :  { %12 = vsyncpa [#allocation4 + $0x1], 0 }
   0x4   :  { %13 = vsyncpa [#allocation6], 0 }
   0x5   :  { %15 = vsyncpa [#allocation6 + $0x1], 0  ;;  %s591_s17 = smov 0   ;;  %s593_s18 = smov 0  }
   0x6   :  { %s595_s19 = smov 0   ;;  %s597_s20 = smov 0  }
   0x7 LB: > { %s610_s3 = sadd.s32 4294967295, %s559_s20   ;;  %s613_s21 = sadd.s32 1, %s559_s20   ;;  %s559_s20 = sphi %s597_s20, %s777_s20   ;;  %s555_s19 = sphi %s595_s19, %s776_s19   ;;  %s551_s18 = sphi %s593_s18, %s775_s18   ;;  %s547_s17 = sphi %s591_s17, %s774_s17  }
   0x8   : > { %s25_s22 = ssub.s32 %s559_s20, %s613_s21  ;;  %s28_s23 = sadd.s32 1, %s555_s19 }
   0x9   : > { %p26_p0 = scmp.eq.s32.totalorder %s25_s22, 0  ;;  %p35_p1 = scmp.ne.s32.totalorder %s555_s19, %s551_s18 }
   0xa   : > { %p36_p2 = scmp.eq.s32.totalorder %s559_s20, 0  ;;  %p41_p3 = scmp.ne.s32.totalorder %s551_s18, %s547_s17 }
   0xb   : > { %s623_s24 = scalar_select %p26_p0, %s555_s19, %s28_s23  }
   0xc   : > { %p625_p4 = por %p36_p2, %p35_p1  ;;  %p42_p5 = scmp.eq.s32.totalorder %s610_s3, 0 }
   0xd   : > { %p133_p6 = scmp.eq.s32.totalorder %s610_s3, 2  ;;  %p432_p8 = scmp.lt.s32.totalorder %s559_s20, 3 }
   0xe   : > { %p631_p7 = por %p42_p5, %p41_p3  ;;  %s641_s28 = sand.u32 1, %s555_s19  }
   0xf   : > { %p636_p9 = por %p133_p6, %p35_p1  ;;  %s407_s29 = sshll.u32 %s641_s28, 3 }
  0x10   : > { %s765_s26 = scalar_select %p631_p7, 1, 0 }
  0x11   : > { %s766_s27 = scalar_select %p636_p9, 1, 0 }
  0x12   : > { %s408_s30 = sshll.u32 %s559_s20, 7  ;;  %s169_s8 = scalar_lea.vmem [#allocation3], %s407_s29 }
  0x13   : > { %s650_s7 = scalar_lea.hbm %s758_s0, %s408_s30  ;;  %s176_s9 = sshll.u32 %s169_s8, 4  ;;  %s654_s9 = int_to_ptr.vmem [resolvable:$true] %s176_s9 }
  0x14   : > { %p658_p10 = pnand %p432_p8, %p625_p4  ;;  %s166_s11 = scalar_lea.sflag [#allocation4], %s641_s28 }
  0x15   : > { %s465_s12 = scalar_lea.hbm %s650_s7, 128  ;;  %s470_s15 = scalar_lea.hbm %s758_s0, 384 }
  0x16   : > { %p466_p13 = scmp.ne.s32.totalorder %s650_s7, %s465_s12  ;;  %p467_p0 = pneg %p658_p10 }
  0x17   : > { %p471_p3 = scmp.lt.s32.totalorder %s650_s7, %s758_s0  ;;  %p472_p4 = scmp.lt.s32.totalorder %s470_s15, %s465_s12 }
  0x18   : > { %p468_p1 = pnand %p467_p0, %p466_p13 }
  0x19   : > { %p473_p5 = por %p472_p4, %p471_p3 }
  0x1a   : > { %p469_p2 = pneg %p468_p1 }
  0x1c   : > { %p474_p6 = pnand %p473_p5, %p469_p2 }
  0x1e   : > { %477 = shalt.err (!%p474_p6)
}
  0x1f   : > { %s478_s22 = scalar_lea.vmem %s654_s9, 128  ;;  %s561_s23 = smov [#allocation3]  }
  0x20   : > { %p479_p8 = scmp.ne.s32.totalorder %s654_s9, %s478_s22  ;;  %s483_s25 = sshll.u32 %s561_s23, 4  ;;  %s484_s25 = int_to_ptr.vmem [resolvable:$false] %s483_s25 }
  0x21   : > { %s485_s5 = scalar_lea.vmem %s484_s25, 256  ;;  %p486_p11 = scmp.lt.s32.totalorder %s654_s9, %s484_s25 }
  0x22   : > { %p481_p13 = pnand %p479_p8, %p467_p0  ;;  %p487_p12 = scmp.lt.s32.totalorder %s485_s5, %s478_s22 }
  0x24   : > { %p482_p1 = pneg %p481_p13  ;;  %p488_p9 = por %p487_p12, %p486_p11 }
  0x26   : > { %p489_p3 = pnand %p488_p9, %p482_p1 }
  0x28   : > { %492 = shalt.err (!%p489_p3)
}
  0x29   : > { %428 = dma.hbm_to_vmem [thread:$0]  (!%p658_p10), %s650_s7, 128, %s654_s9, %s166_s11  }
  0x2a   : > { %p768_p2 = scmp.lt.s32.totalorder %s559_s20, 4  ;;  %p769_p4 = scmp.ge.s32.totalorder %s559_s20, 1 }
  0x2b   : > { %s702_s13 = scalar_lea.hbm %s759_s1, %s408_s30  ;;  %s187_s14 = scalar_lea.vmem [#allocation5], %s407_s29 }
  0x2c   : > { %p693_p5 = pnand %p769_p4, %p768_p2  ;;  %s194_s15 = sshll.u32 %s187_s14, 4  ;;  %s195_s15 = int_to_ptr.vmem [resolvable:$true] %s194_s15 }
  0x2d   : > { %s184_s7 = scalar_lea.sflag [#allocation6], %s641_s28  ;;  %s493_s9 = scalar_lea.hbm %s702_s13, 128 }
  0x2e   : > { %s770_s6 = scalar_select %p693_p5, 1, 0 }
  0x2f   : > { %p494_p9 = scmp.ne.s32.totalorder %s702_s13, %s493_s9  ;;  %s498_s16 = scalar_lea.hbm %s759_s1, 384 }
  0x30   : > { %p499_p6 = scmp.lt.s32.totalorder %s702_s13, %s759_s1  ;;  %p500_p8 = scmp.lt.s32.totalorder %s498_s16, %s493_s9 }
  0x31   : > { %p496_p11 = pnand %p494_p9, %p467_p0 }
  0x32   : > { %p501_p13 = por %p500_p8, %p499_p6 }
  0x33   : > { %p497_p12 = pneg %p496_p11 }
  0x35   : > { %p502_p1 = pnand %p501_p13, %p497_p12 }
  0x37   : > { %505 = shalt.err (!%p502_p1)
}
  0x38   : > { %s506_s29 = scalar_lea.vmem %s195_s15, 128  ;;  %s562_s28 = smov [#allocation5]  }
  0x39   : > { %p507_p3 = scmp.ne.s32.totalorder %s195_s15, %s506_s29  ;;  %s511_s22 = sshll.u32 %s562_s28, 4  ;;  %s512_s22 = int_to_ptr.vmem [resolvable:$false] %s511_s22 }
  0x3a   : > { %s513_s23 = scalar_lea.vmem %s512_s22, 256  ;;  %p514_p9 = scmp.lt.s32.totalorder %s195_s15, %s512_s22 }
  0x3b   : > { %p509_p2 = pnand %p507_p3, %p467_p0  ;;  %p515_p11 = scmp.lt.s32.totalorder %s513_s23, %s506_s29 }
  0x3d   : > { %p510_p4 = pneg %p509_p2  ;;  %p516_p7 = por %p515_p11, %p514_p9 }
  0x3f   : > { %p517_p5 = pnand %p516_p7, %p510_p4 }
  0x41   : > { %520 = shalt.err (!%p517_p5)
}
  0x42   : > { %431 = dma.hbm_to_vmem [thread:$0]  (!%p658_p10), %s702_s13, 128, %s195_s15, %s184_s7  }
  0x43   : > { %p771_p12 = scmp.ne.s32.totalorder %s770_s6, 0 }
  0x44   : > { %s205_s25 = sand.u32 (!%p771_p12), 1, %s551_s18   ;;  %p772_p0 = scmp.ne.s32.totalorder (!%p771_p12), %s765_s26, 0 }
  0x45   : > { %203 = sbr.rel (%p771_p12) target bundleno = 235 (0xeb), region = 36  ;;  %s412_s5 = sshll.u32 (!%p771_p12), %s205_s25, 3 }
  0x46   : > { %s206_s8 = scalar_lea.sflag (!%p771_p12), [#allocation4], %s205_s25  ;;  %s209_s12 = scalar_lea.vmem (!%p771_p12), [#allocation3], %s412_s5 }
  0x4a   : > { %538 = dma.done.wait (%p772_p0), %s206_s8, 128  }
  0x4b   : > { %540 = vsyncadd (%p772_p0), %s206_s8, 4294967168  ;;  %s215_s14 = scalar_lea.sflag [#allocation6], %s205_s25  ;;  %s218_s9 = scalar_lea.vmem [#allocation5], %s412_s5 }
  0x4c   : > { %542 = dma.done.wait (%p772_p0), %s215_s14, 128  }
  0x4d   : > { %544 = vsyncadd (%p772_p0), %s215_s14, 4294967168  ;;  %v415_v0 = vld [vmem:[%s760_s2] ss:$0 sm:$0xff]  ;;  %vm258_vm0 = vcmask 261120   ;;  %v250_v2 = vld [vmem:[%s218_s9] sm:$0xff]  ;;  %s248_s13 = sld [smem:[#allocation2]] }
  0x4e   : > { %v249_v1 = vld [vmem:[%s209_s12] sm:$0xff]  ;;  %v266_v4 = vmul.f32 %v415_v0, %v250_v2  ;;  %s414_s15 = sshll.u32 %s205_s25, 4  ;;  %vm264_vm1 = vcmask 7168   ;;  %p773_p7 = scmp.ne.s32.totalorder %s766_s27, 0 }
  0x4f   : > { %v257_v3 = vmul.f32 %v415_v0, %v249_v1  ;;  %s246_s26 = scalar_lea.vmem [#allocation7], %s414_s15  ;;  %s418_s7 = sshll.u32 (%p773_p7), %s610_s3, 3 }
  0x50   : > { %v267_v6 = vsel %vm258_vm0, %v266_v4, 0.0  ;;  %s281_s16 = scalar_lea.vmem (%p773_p7), %s762_s4, %s418_s7 }
  0x51   : > { %v259_v5 = vsel %vm258_vm0, %v257_v3, 0.0 }
  0x52   : > { %260 = vadd.xlane.f32.xlu0 %v259_v5 }
  0x53   : > { %v262_v7 = vstv %s248_s13 }
  0x56   : > { %268 = vadd.xlane.f32.xlu0 %v267_v6 }
  0xdb   : > { %v261_v8 = vpop.xlane.xlu0 %260 }
  0xdc   : > { %v263_v9 = vadd.f32 %v262_v7, %v261_v8 }
  0xde   : > { %265 = vst.msk [vmem:[%s246_s26] sm:$0xff] %vm264_vm1, %v263_v9  ;;  %279 = sbr.rel (!%p773_p7) target bundleno = 235 (0xeb), region = 48 }
  0xdf   : > { %v269_v10 = vpop.xlane.xlu0 %268 }
  0xe0   : > { %v270_v11 = vadd.f32 %v269_v10, %v262_v7 }
  0xe2   : > { %416 = vst.msk [vmem:[%s246_s26 + $0x8] sm:$0xff] %vm264_vm1, %v270_v11 }
  0xe5   : > { %v312_v12 = vld [vmem:[%s246_s26] sm:$0xff] }
  0xe6   : > { %313 = vst [vmem:[%s281_s16] sm:$0xff] %v312_v12 }
  0xe9   : > { %v314_v13 = vld [vmem:[%s246_s26 + $0x8] sm:$0xff] }
  0xea   : > { %315 = vst [vmem:[%s281_s16 + $0x18] sm:$0xff] %v314_v13 }
  0xeb PF: > { %p18_p10 = scmp.ge.s32.totalorder %s613_s21, 5   ;;  %s774_s17 = smov %s551_s18 }
  0xec   : > { %s775_s18 = smov %s555_s19  ;;  %s776_s19 = smov %s623_s24 }
  0xed   : > { %s777_s20 = smov %s613_s21  ;;  %20 = sbr.rel (!%p18_p10) target bundleno = 7 (0x7), region = 128 }
  0xf2   :  { %331 = vsyncpa [#allocation4], 1 }
  0xf3   :  { %333 = vsyncpa [#allocation4 + $0x1], 1 }
  0xf4   :  { %334 = vsyncpa [#allocation6], 1 }
  0xf5   :  { %336 = vsyncpa [#allocation6 + $0x1], 1 }

</bundles_post_ra>
